<compile_context>
chip_gen: v5e
topology: v5e:2x2
jax: 0.10.0
libtpu: 0.0.40
codegen_flags: <defaults>
</compile_context>

<pallas_src>
import functools
import math

import jax
import jax.numpy as jnp
import numpy as np
from jax.experimental import pallas as pl
from jax.experimental.pallas import tpu as pltpu

SIZES = (1, 3, 6, 8)


def _round_up(x: int, m: int) -> int:
    return ((x + m - 1) // m) * m


def _adaptive_bins(in_size: int, out_size: int):
    """PyTorch AdaptiveAvgPool bin boundaries: [start, end) per output index."""
    bins = []
    for i in range(out_size):
        start = (i * in_size) // out_size
        end = -((-(i + 1) * in_size) // out_size)  # ceil((i+1)*in/out)
        bins.append((start, end))
    return bins


@functools.lru_cache(maxsize=None)
def _build_pool_matrix_padded(h: int, w: int, sizes, hw_pad: int, k_pad: int):
    """P of shape (hw_pad, k_pad): column k = averaging weights of pooled
    output k; padded rows/cols are zero so they contribute nothing."""
    cols = []
    for s in sizes:
        hb = _adaptive_bins(h, s)
        wb = _adaptive_bins(w, s)
        for (hs, he) in hb:
            for (ws, we) in wb:
                m = np.zeros((h, w), dtype=np.float32)
                area = (he - hs) * (we - ws)
                m[hs:he, ws:we] = 1.0 / area
                cols.append(m.reshape(-1))
    p = np.stack(cols, axis=-1)  # (h*w, K)
    out = np.zeros((hw_pad, k_pad), dtype=np.float32)
    out[: h * w, : p.shape[1]] = p
    return out


def psp_kernel(x_ref, p_ref, o_ref, acc_ref):
    """x_ref: (TILE_M, TILE_HW), p_ref: (TILE_HW, K_pad), o_ref: (TILE_M, K_pad)."""
    k_step = pl.program_id(1)

    @pl.when(k_step == 0)
    def _():
        acc_ref[...] = jnp.zeros_like(acc_ref)

    acc_ref[...] += jnp.dot(
        x_ref[...], p_ref[...], preferred_element_type=jnp.float32
    )

    @pl.when(k_step == pl.num_programs(1) - 1)
    def _():
        o_ref[...] = acc_ref[...].astype(o_ref.dtype)


def psp_module(feats: jax.Array, sizes=SIZES) -> jax.Array:
    """feats: (n, c, h, w) -> (n, c, sum(s*s for s in sizes)). Matches
    torch.cat([AdaptiveAvgPool2d(s)(feats).view(n, c, -1) for s in sizes], -1)."""
    n, c, h, w = feats.shape
    nc, hw = n * c, h * w
    k = sum(s * s for s in sizes)

    # Tile sizing: rows in multiples of 8 (sublane), HW in multiples of 128
    # (lane). Bounded so double-buffered tiles fit default scoped VMEM on all
    # generations (x: <=4 MiB, P: <=1 MiB, out/acc: <=0.25 MiB per buffer).
    tile_m = min(512, _round_up(nc, 8))
    tile_hw = min(2048, _round_up(hw, 128))
    k_pad = _round_up(k, 128)

    nc_pad = _round_up(nc, tile_m)
    hw_pad = _round_up(hw, tile_hw)

    x_flat = feats.reshape(nc, hw)
    if nc_pad != nc or hw_pad != hw:
        x_flat = jnp.pad(x_flat, ((0, nc_pad - nc), (0, hw_pad - hw)))

    pool_mat = jnp.asarray(
        _build_pool_matrix_padded(h, w, tuple(sizes), hw_pad, k_pad),
        dtype=feats.dtype,
    )

    grid = (nc_pad // tile_m, hw_pad // tile_hw)

    cost = pl.CostEstimate(
        flops=2 * nc_pad * hw_pad * k_pad,
        transcendentals=0,
        bytes_accessed=4 * (nc_pad * hw_pad + hw_pad * k_pad + nc_pad * k_pad),
    )

    out_padded = pl.pallas_call(
        psp_kernel,
        out_shape=jax.ShapeDtypeStruct((nc_pad, k_pad), feats.dtype),
        grid_spec=pltpu.PrefetchScalarGridSpec(
            num_scalar_prefetch=0,
            grid=grid,
            in_specs=[
                # Activations: stream row tiles, step over HW reduction axis.
                pl.BlockSpec((tile_m, tile_hw), lambda i, kk: (i, kk)),
                # Pool matrix: only depends on the reduction step.
                pl.BlockSpec((tile_hw, k_pad), lambda i, kk: (kk, 0)),
            ],
            out_specs=pl.BlockSpec((tile_m, k_pad), lambda i, kk: (i, 0)),
            scratch_shapes=[pltpu.VMEM((tile_m, k_pad), jnp.float32)],
        ),
        compiler_params=pltpu.CompilerParams(
            dimension_semantics=("parallel", "arbitrary"),
        ),
        cost_estimate=cost,
    )(x_flat, pool_mat)

    return out_padded[:nc, :k].reshape(n, c, k)


def psp_reference(feats: jax.Array, sizes=SIZES) -> jax.Array:
    """Pure-JAX reference mirroring torch adaptive_avg_pool2d + cat."""
    n, c, h, w = feats.shape
    outs = []
    for s in sizes:
        hb = _adaptive_bins(h, s)
        wb = _adaptive_bins(w, s)
        pooled = jnp.zeros((n, c, s, s), feats.dtype)
        for i, (hs, he) in enumerate(hb):
            for j, (ws, we) in enumerate(wb):
                pooled = pooled.at[:, :, i, j].set(
                    jnp.mean(feats[:, :, hs:he, ws:we], axis=(2, 3))
                )
        outs.append(pooled.reshape(n, c, -1))
    return jnp.concatenate(outs, axis=-1)


if __name__ == "__main__":
    key = jax.random.PRNGKey(0)
    n, c, h, w = 2, 4, 16, 16
    feats = jax.random.normal(key, (n, c, h, w), dtype=jnp.float32)

    out = psp_module(feats)
    out = jax.block_until_ready(out)

    ref = psp_reference(feats)
    assert out.shape == (n, c, sum(s * s for s in SIZES)), out.shape
    np.testing.assert_allclose(np.asarray(out), np.asarray(ref), rtol=1e-5, atol=1e-5)

    print("KERNEL_OK")
</pallas_src>

<mosaic_0001>
module attributes {stable_mosaic.version = 11 : i64} {
  func.func @psp_kernel(%arg0: i32, %arg1: i32, %arg2: memref<8x256xf32, #tpu.memory_space<vmem>>, %arg3: memref<256x128xf32, #tpu.memory_space<vmem>>, %arg4: memref<8x128xf32, #tpu.memory_space<vmem>>, %arg5: memref<8x128xf32, #tpu.memory_space<vmem>>) attributes {dimension_semantics = [#tpu.dimension_semantics<parallel>, #tpu.dimension_semantics<arbitrary>], iteration_bounds = array<i64: 1, 1>, scalar_prefetch = 0 : i64, scratch_operands = 1 : i64, tpu.core_type = #tpu.core_type<tc>, window_params = [{transform_indices = @transform_0, window_bounds = array<i64: 8, 256>}, {transform_indices = @transform_1, window_bounds = array<i64: 256, 128>}, {transform_indices = @transform_2, window_bounds = array<i64: 8, 128>}]} {
    %c0_i32 = arith.constant 0 : i32
    %0 = arith.cmpi eq, %arg1, %c0_i32 : i32
    %1 = arith.extui %0 : i1 to i32
    %c0_i32_0 = arith.constant 0 : i32
    %2 = arith.cmpi ne, %1, %c0_i32_0 : i32
    scf.if %2 {
      %cst_10 = arith.constant 0.000000e+00 : f32
      %12 = vector.broadcast %cst_10 : f32 to vector<8x128xf32>
      %c0_11 = arith.constant 0 : index
      %c0_12 = arith.constant 0 : index
      %13 = vector.load %arg5[%c0_11, %c0_12] : memref<8x128xf32, #tpu.memory_space<vmem>>, vector<8x128xf32>
      tpu.vector_store %arg5[%c0_11, %c0_12], %12 {strides = array<i32>} : memref<8x128xf32, #tpu.memory_space<vmem>>, vector<8x128xf32>,
    } else {
    }
    %c0 = arith.constant 0 : index
    %c0_1 = arith.constant 0 : index
    %3 = vector.load %arg5[%c0, %c0_1] : memref<8x128xf32, #tpu.memory_space<vmem>>, vector<8x128xf32>
    %c0_2 = arith.constant 0 : index
    %c0_3 = arith.constant 0 : index
    %4 = vector.load %arg2[%c0_2, %c0_3] : memref<8x256xf32, #tpu.memory_space<vmem>>, vector<8x256xf32>
    %c0_4 = arith.constant 0 : index
    %c0_5 = arith.constant 0 : index
    %5 = vector.load %arg3[%c0_4, %c0_5] : memref<256x128xf32, #tpu.memory_space<vmem>>, vector<256x128xf32>
    %cst = arith.constant dense<0.000000e+00> : vector<8x128xf32>
    %6 = tpu.matmul %4, %5, %cst {dimension_numbers = #tpu.dot_dimension_numbers<[1], [0], [0], [1], [0, 0, 1, 1], [], []>} : vector<8x256xf32>, vector<256x128xf32>, vector<8x128xf32> -> vector<8x128xf32>
    %7 = arith.addf %3, %6 : vector<8x128xf32>
    %c0_6 = arith.constant 0 : index
    %c0_7 = arith.constant 0 : index
    %8 = vector.load %arg5[%c0_6, %c0_7] : memref<8x128xf32, #tpu.memory_space<vmem>>, vector<8x128xf32>
    tpu.vector_store %arg5[%c0_6, %c0_7], %7 {strides = array<i32>} : memref<8x128xf32, #tpu.memory_space<vmem>>, vector<8x128xf32>,
    %c0_i32_8 = arith.constant 0 : i32
    %9 = arith.cmpi eq, %arg1, %c0_i32_8 : i32
    %10 = arith.extui %9 : i1 to i32
    %c0_i32_9 = arith.constant 0 : i32
    %11 = arith.cmpi ne, %10, %c0_i32_9 : i32
    scf.if %11 {
      %c0_10 = arith.constant 0 : index
      %c0_11 = arith.constant 0 : index
      %12 = vector.load %arg5[%c0_10, %c0_11] : memref<8x128xf32, #tpu.memory_space<vmem>>, vector<8x128xf32>
      %c0_12 = arith.constant 0 : index
      %c0_13 = arith.constant 0 : index
      %13 = vector.load %arg4[%c0_12, %c0_13] : memref<8x128xf32, #tpu.memory_space<vmem>>, vector<8x128xf32>
      tpu.vector_store %arg4[%c0_12, %c0_13], %12 {strides = array<i32>} : memref<8x128xf32, #tpu.memory_space<vmem>>, vector<8x128xf32>,
    } else {
    }
    return
  }
  func.func @transform_0(%arg0: i32, %arg1: i32) -> (i32, i32) {
    %c0_i32 = arith.constant 0 : i32
    return %arg0, %arg1 : i32, i32
  }
  func.func @transform_1(%arg0: i32, %arg1: i32) -> (i32, i32) {
    %c0_i32 = arith.constant 0 : i32
    %c0_i32_0 = arith.constant 0 : i32
    return %arg1, %c0_i32 : i32, i32
  }
  func.func @transform_2(%arg0: i32, %arg1: i32) -> (i32, i32) {
    %c0_i32 = arith.constant 0 : i32
    %c0_i32_0 = arith.constant 0 : i32
    return %arg0, %c0_i32 : i32, i32
  }
}

</mosaic_0001>

<bundles_post_ra>
// kernel: tpu_custom_call.1
= control target key start
LH: loop header
LB: loop body
LE: loop exit
PB: predicated region body
PF: predicated region fallthrough
CT: control target
= control target key end

     0   :  { %7 = vsyncpa [#allocation4], 0  ;;  %s259_s0 = inlined_call_operand.hbm [shape: f32[8,256], index: 0, kind: input, shape index: {}]   ;;  %s260_s1 = inlined_call_operand.hbm [shape: f32[256,128], index: 1, kind: input, shape index: {}]   ;;  %s261_s2 = inlined_call_operand.hbm [shape: f32[8,128], index: 2, kind: output, shape index: {}]  }
   0x1   :  { %8 = vsyncpa [#allocation7], 0 }
   0x2   :  { %9 = vsyncpa [#allocation5], 0  ;;  %s15_s11 = sshll.u32 %s259_s0, 4  ;;  %s230_s12 = smov [#allocation3]   ;;  %s16_s11 = int_to_ptr.hbm [resolvable:$true] %s15_s11 }
   0x3   :  { %s17_s13 = sshll.u32 %s230_s12, 4  ;;  %s25_s16 = sshll.u32 %s260_s1, 4  ;;  %s18_s13 = int_to_ptr.vmem [resolvable:$true] %s17_s13  ;;  %s26_s16 = int_to_ptr.hbm [resolvable:$true] %s25_s16 }
   0x4   :  { %20 = dma.hbm_to_vmem [thread:$0]  %s16_s11, 256, %s18_s13, [#allocation4]  }
   0x5   :  { %s231_s17 = smov [#allocation6]   ;;  %s232_s19 = smov 128  }
   0x6   :  { %s27_s18 = sshll.u32 %s231_s17, 4  ;;  %s233_s20 = smov 8   ;;  %s28_s18 = int_to_ptr.vmem [resolvable:$true] %s27_s18 }
   0x7   :  { %33 = dma.hbm_to_vmem [thread:$0]  %s26_s16, 4096, %s28_s18, [#allocation7], %s232_s19, %s232_s19, %s233_s20  }
   0x8   :  { %224 = dma.done.wait [#allocation4], 256  }
   0x9   :  { %225 = vsyncadd [#allocation4], 4294967040 }
   0xa   :  { %226 = dma.done.wait [#allocation7], 4096  }
   0xb   :  { %227 = vsyncadd [#allocation7], 4294963200  ;;  %v65_v0 = vld [vmem:[#allocation6 + $0x78] sm:$0xff]  ;;  %v64_v2 = vld [vmem:[#allocation6 + $0x70] sm:$0xff]  ;;  %s234_s0 = smov [#allocation8]   ;;  %s136_s23 = sshll.u32 %s261_s2, 4  ;;  %s137_s23 = int_to_ptr.hbm [resolvable:$true] %s136_s23 }
   0xc   :  { %v81_v1 = vld [vmem:[#allocation6 + $0xf8] sm:$0xff]  ;;  %82 = vmatpush.msra.mxu0 %v65_v0  ;;  %v80_v3 = vld [vmem:[#allocation6 + $0xf0] sm:$0xff]  ;;  %v63_v4 = vld [vmem:[#allocation6 + $0x68] sm:$0xff]  ;;  %s134_s1 = sshll.u32 %s234_s0, 4  ;;  %s135_s1 = int_to_ptr.vmem [resolvable:$true] %s134_s1 }
   0xd   :  { %102 = vmatpush.msra.mxu1 %v81_v1  ;;  %v79_v5 = vld [vmem:[#allocation6 + $0xe8] sm:$0xff]  ;;  %v62_v6 = vld [vmem:[#allocation6 + $0x60] sm:$0xff]  ;;  %v61_v8 = vld [vmem:[#allocation6 + $0x58] sm:$0xff] }
   0xe   :  { %83 = vmatpush.msra.mxu0 %v64_v2  ;;  %v78_v7 = vld [vmem:[#allocation6 + $0xe0] sm:$0xff]  ;;  %v77_v9 = vld [vmem:[#allocation6 + $0xd8] sm:$0xff]  ;;  %v60_v10 = vld [vmem:[#allocation6 + $0x50] sm:$0xff] }
   0xf   :  { %103 = vmatpush.msra.mxu1 %v80_v3  ;;  %v76_v11 = vld [vmem:[#allocation6 + $0xd0] sm:$0xff]  ;;  %v59_v12 = vld [vmem:[#allocation6 + $0x48] sm:$0xff]  ;;  %v58_v14 = vld [vmem:[#allocation6 + $0x40] sm:$0xff] }
  0x10   :  { %84 = vmatpush.msra.mxu0 %v63_v4  ;;  %v75_v13 = vld [vmem:[#allocation6 + $0xc8] sm:$0xff]  ;;  %v74_v15 = vld [vmem:[#allocation6 + $0xc0] sm:$0xff]  ;;  %v57_v16 = vld [vmem:[#allocation6 + $0x38] sm:$0xff] }
  0x11   :  { %104 = vmatpush.msra.mxu1 %v79_v5  ;;  %v73_v17 = vld [vmem:[#allocation6 + $0xb8] sm:$0xff]  ;;  %v56_v18 = vld [vmem:[#allocation6 + $0x30] sm:$0xff]  ;;  %v55_v20 = vld [vmem:[#allocation6 + $0x28] sm:$0xff] }
  0x12   :  { %85 = vmatpush.msra.mxu0 %v62_v6  ;;  %v72_v19 = vld [vmem:[#allocation6 + $0xb0] sm:$0xff]  ;;  %v71_v21 = vld [vmem:[#allocation6 + $0xa8] sm:$0xff]  ;;  %v54_v22 = vld [vmem:[#allocation6 + $0x20] sm:$0xff] }
  0x13   :  { %105 = vmatpush.msra.mxu1 %v78_v7  ;;  %v70_v23 = vld [vmem:[#allocation6 + $0xa0] sm:$0xff]  ;;  %v53_v24 = vld [vmem:[#allocation6 + $0x18] sm:$0xff]  ;;  %v52_v26 = vld [vmem:[#allocation6 + $0x10] sm:$0xff] }
  0x14   :  { %86 = vmatpush.msra.mxu0 %v61_v8  ;;  %v69_v25 = vld [vmem:[#allocation6 + $0x98] sm:$0xff]  ;;  %v68_v27 = vld [vmem:[#allocation6 + $0x90] sm:$0xff]  ;;  %v51_v28 = vld [vmem:[#allocation6 + $0x8] sm:$0xff] }
  0x15   :  { %106 = vmatpush.msra.mxu1 %v77_v9  ;;  %v67_v29 = vld [vmem:[#allocation6 + $0x88] sm:$0xff]  ;;  %v50_v30 = vld [vmem:[#allocation6] sm:$0xff]  ;;  %v48_v32 = vld [vmem:[#allocation3] sm:$0xff] }
  0x16   :  { %87 = vmatpush.msra.mxu0 %v60_v10  ;;  %v66_v31 = vld [vmem:[#allocation6 + $0x80] sm:$0xff]  ;;  %v49_v33 = vld [vmem:[#allocation3 + $0x8] sm:$0xff] }
  0x17   :  { %107 = vmatpush.msra.mxu1 %v76_v11 }
  0x18   :  { %88 = vmatpush.msra.mxu0 %v59_v12 }
  0x19   :  { %108 = vmatpush.msra.mxu1 %v75_v13 }
  0x1a   :  { %89 = vmatpush.msra.mxu0 %v58_v14 }
  0x1b   :  { %109 = vmatpush.msra.mxu1 %v74_v15 }
  0x1c   :  { %90 = vmatpush.msra.mxu0 %v57_v16 }
  0x1d   :  { %110 = vmatpush.msra.mxu1 %v73_v17 }
  0x1e   :  { %91 = vmatpush.msra.mxu0 %v56_v18 }
  0x1f   :  { %111 = vmatpush.msra.mxu1 %v72_v19 }
  0x20   :  { %92 = vmatpush.msra.mxu0 %v55_v20 }
  0x21   :  { %112 = vmatpush.msra.mxu1 %v71_v21 }
  0x22   :  { %93 = vmatpush.msra.mxu0 %v54_v22 }
  0x23   :  { %113 = vmatpush.msra.mxu1 %v70_v23 }
  0x24   :  { %94 = vmatpush.msra.mxu0 %v53_v24 }
  0x25   :  { %114 = vmatpush.msra.mxu1 %v69_v25 }
  0x26   :  { %95 = vmatpush.msra.mxu0 %v52_v26 }
  0x27   :  { %115 = vmatpush.msra.mxu1 %v68_v27 }
  0x28   :  { %96 = vmatpush.msra.mxu0 %v51_v28 }
  0x29   :  { %116 = vmatpush.msra.mxu1 %v67_v29 }
  0x2a   :  { %97 = vmatpush.msra.mxu0 %v50_v30 }
  0x2b   :  { %117 = vmatpush.msra.mxu1 %v66_v31  ;;  %98 = vmatmul.f32.vlgmr.msra.gmra.mxu0 %v48_v32 }
  0x2c   :  { %118 = vmatmul.f32.vlgmr.msra.gmra.mxu1 %v49_v33 }
  0xa8   :  { %v99_v34 = vpop.f32.mrf.mxu0 }
  0xa9   :  { %v119_v35 = vpop.f32.mrf.mxu1 }
  0xaa   :  { %v120_v36 = vadd.f32 %v119_v35, %v99_v34 }
  0xac   :  { %128 = vst [vmem:[#allocation8] sm:$0xff] %v120_v36 }
  0xad   :  { %139 = dma.vmem_to_hbm [thread:$0]  %s135_s1, 128, %s137_s23, [#allocation5]  }
  0xae   :  { %228 = dma.done.wait [#allocation5], 128  }
  0xaf   :  { %229 = vsyncadd [#allocation5], 4294967168 }
  0xb0   :  { %144 = vsyncpa [#allocation4], 1 }
  0xb1   :  { %145 = vsyncpa [#allocation7], 1 }
  0xb2   :  { %146 = vsyncpa [#allocation5], 1 }

</bundles_post_ra>
